<compile_context>
chip_gen: v7x
topology: tpu7x:2x2x1
jax: 0.10.0
libtpu: 0.0.40
codegen_flags: <defaults>
</compile_context>

<pallas_src>
import numpy as np
import jax
import jax.numpy as jnp
from jax.experimental import pallas as pl
from jax.experimental.pallas import tpu as pltpu


def _discriminator_kernel(x_ref,                 # VMEM: (TM, In)
                          w1_ref, b1_ref,        # VMEM: (In, H), (1, H)
                          w2_ref, b2_ref,        # VMEM: (H, Out), (1, Out)
                          w3_ref, b3_ref,        # VMEM: (Out, Out), (1, Out)
                          o_ref):                # VMEM out: (TM, Out)
    x = x_ref[...]

    # dense1 + ReLU  (MXU matmul, f32 accumulation)
    h1 = jnp.dot(x, w1_ref[...], preferred_element_type=jnp.float32) + b1_ref[...]
    h1 = jnp.maximum(h1, 0.0)

    # dense2 + ReLU
    h2 = jnp.dot(h1, w2_ref[...], preferred_element_type=jnp.float32) + b2_ref[...]
    h2 = jnp.maximum(h2, 0.0)

    # dense3 (no activation)
    o_ref[...] = (
        jnp.dot(h2, w3_ref[...], preferred_element_type=jnp.float32) + b3_ref[...]
    ).astype(o_ref.dtype)


def _round_up(x, m):
    return ((x + m - 1) // m) * m


def discriminator_forward(x, params, *, tm=128):
    """params = (w1, b1, w2, b2, w3, b3); w_i shaped (in, out), b_i shaped (1, out)."""
    w1, b1, w2, b2, w3, b3 = params
    N, In = x.shape
    H = w1.shape[1]
    Out = w2.shape[1]

    # Row tile: at most `tm`, at least a multiple of the 8-row sublane granule.
    tm = min(tm, _round_up(N, 8))
    Np = _round_up(N, tm)
    if Np != N:
        x = jnp.pad(x, ((0, Np - N), (0, 0)))

    grid = (Np // tm,)

    out = pl.pallas_call(
        _discriminator_kernel,
        out_shape=jax.ShapeDtypeStruct((Np, Out), x.dtype),
        grid=grid,
        in_specs=[
            pl.BlockSpec((tm, In), lambda i: (i, 0)),     # x: streamed row tiles
            pl.BlockSpec((In, H), lambda i: (0, 0)),      # w1 (resident)
            pl.BlockSpec((1, H), lambda i: (0, 0)),       # b1
            pl.BlockSpec((H, Out), lambda i: (0, 0)),     # w2
            pl.BlockSpec((1, Out), lambda i: (0, 0)),     # b2
            pl.BlockSpec((Out, Out), lambda i: (0, 0)),   # w3
            pl.BlockSpec((1, Out), lambda i: (0, 0)),     # b3
        ],
        out_specs=pl.BlockSpec((tm, Out), lambda i: (i, 0)),
        compiler_params=pltpu.CompilerParams(
            dimension_semantics=("parallel",),
        ),
    )(x, w1, b1, w2, b2, w3, b3)

    return out[:N]


def _init_linear(key, fan_in, fan_out):
    """Deterministic init mimicking torch.nn.Linear (uniform +/- 1/sqrt(fan_in)).

    Weight is returned already transposed to (fan_in, fan_out)."""
    kw, kb = jax.random.split(key)
    bound = 1.0 / np.sqrt(fan_in)
    w = jax.random.uniform(kw, (fan_in, fan_out), jnp.float32, -bound, bound)
    b = jax.random.uniform(kb, (1, fan_out), jnp.float32, -bound, bound)
    return w, b


def _reference(x, params):
    w1, b1, w2, b2, w3, b3 = params
    h1 = jnp.maximum(x @ w1 + b1, 0.0)
    h2 = jnp.maximum(h1 @ w2 + b2, 0.0)
    return h2 @ w3 + b3


if __name__ == "__main__":
    # Small, module-consistent shapes (batch of node/sample rows x features).
    N = 256                 # batch rows (2 grid steps at tm=128)
    in_channel = 16
    hidden = 32
    out_channel = 8

    key = jax.random.PRNGKey(0)
    kx, k1, k2, k3 = jax.random.split(key, 4)

    x = jax.random.normal(kx, (N, in_channel), jnp.float32)

    w1, b1 = _init_linear(k1, in_channel, hidden)
    w2, b2 = _init_linear(k2, hidden, out_channel)
    w3, b3 = _init_linear(k3, out_channel, out_channel)
    params = (w1, b1, w2, b2, w3, b3)

    out = discriminator_forward(x, params)
    out = jax.block_until_ready(out)

    out_ref = _reference(x, params)
    assert out.shape == (N, out_channel)
    np.testing.assert_allclose(np.asarray(out), np.asarray(out_ref),
                               rtol=1e-5, atol=1e-5)

    print("KERNEL_OK")
</pallas_src>

<mosaic_0001>
module attributes {stable_mosaic.version = 11 : i64} {
  func.func @_discriminator_kernel(%arg0: i32, %arg1: memref<128x16xf32, #tpu.memory_space<vmem>>, %arg2: memref<16x32xf32, #tpu.memory_space<vmem>>, %arg3: memref<1x32xf32, #tpu.memory_space<vmem>>, %arg4: memref<32x8xf32, #tpu.memory_space<vmem>>, %arg5: memref<1x8xf32, #tpu.memory_space<vmem>>, %arg6: memref<8x8xf32, #tpu.memory_space<vmem>>, %arg7: memref<1x8xf32, #tpu.memory_space<vmem>>, %arg8: memref<128x8xf32, #tpu.memory_space<vmem>>) attributes {dimension_semantics = [#tpu.dimension_semantics<parallel>], iteration_bounds = array<i64: 2>, scalar_prefetch = 0 : i64, scratch_operands = 0 : i64, tpu.core_type = #tpu.core_type<tc>, window_params = [{transform_indices = @transform_0, window_bounds = array<i64: 128, 16>}, {pipeline_mode = #tpu.pipeline_mode<synchronous>, transform_indices = @transform_1, window_bounds = array<i64: 16, 32>}, {pipeline_mode = #tpu.pipeline_mode<synchronous>, transform_indices = @transform_2, window_bounds = array<i64: 1, 32>}, {pipeline_mode = #tpu.pipeline_mode<synchronous>, transform_indices = @transform_3, window_bounds = array<i64: 32, 8>}, {pipeline_mode = #tpu.pipeline_mode<synchronous>, transform_indices = @transform_4, window_bounds = array<i64: 1, 8>}, {pipeline_mode = #tpu.pipeline_mode<synchronous>, transform_indices = @transform_5, window_bounds = array<i64: 8, 8>}, {pipeline_mode = #tpu.pipeline_mode<synchronous>, transform_indices = @transform_6, window_bounds = array<i64: 1, 8>}, {transform_indices = @transform_7, window_bounds = array<i64: 128, 8>}]} {
    %c0 = arith.constant 0 : index
    %c0_0 = arith.constant 0 : index
    %0 = vector.load %arg1[%c0, %c0_0] : memref<128x16xf32, #tpu.memory_space<vmem>>, vector<128x16xf32>
    %c0_1 = arith.constant 0 : index
    %c0_2 = arith.constant 0 : index
    %1 = vector.load %arg2[%c0_1, %c0_2] : memref<16x32xf32, #tpu.memory_space<vmem>>, vector<16x32xf32>
    %cst = arith.constant dense<0.000000e+00> : vector<128x32xf32>
    %2 = tpu.matmul %0, %1, %cst {dimension_numbers = #tpu.dot_dimension_numbers<[1], [0], [0], [1], [0, 0, 1, 1], [], []>} : vector<128x16xf32>, vector<16x32xf32>, vector<128x32xf32> -> vector<128x32xf32>
    %c0_3 = arith.constant 0 : index
    %c0_4 = arith.constant 0 : index
    %3 = vector.load %arg3[%c0_3, %c0_4] : memref<1x32xf32, #tpu.memory_space<vmem>>, vector<1x32xf32>
    %4 = vector.broadcast %3 : vector<1x32xf32> to vector<128x32xf32>
    %5 = arith.addf %2, %4 : vector<128x32xf32>
    %cst_5 = arith.constant 0.000000e+00 : f32
    %6 = vector.broadcast %cst_5 : f32 to vector<128x32xf32>
    %7 = arith.maximumf %5, %6 : vector<128x32xf32>
    %c0_6 = arith.constant 0 : index
    %c0_7 = arith.constant 0 : index
    %8 = vector.load %arg4[%c0_6, %c0_7] : memref<32x8xf32, #tpu.memory_space<vmem>>, vector<32x8xf32>
    %cst_8 = arith.constant dense<0.000000e+00> : vector<128x8xf32>
    %9 = tpu.matmul %7, %8, %cst_8 {dimension_numbers = #tpu.dot_dimension_numbers<[1], [0], [0], [1], [0, 0, 1, 1], [], []>} : vector<128x32xf32>, vector<32x8xf32>, vector<128x8xf32> -> vector<128x8xf32>
    %c0_9 = arith.constant 0 : index
    %c0_10 = arith.constant 0 : index
    %10 = vector.load %arg5[%c0_9, %c0_10] : memref<1x8xf32, #tpu.memory_space<vmem>>, vector<1x8xf32>
    %11 = vector.broadcast %10 : vector<1x8xf32> to vector<128x8xf32>
    %12 = arith.addf %9, %11 : vector<128x8xf32>
    %cst_11 = arith.constant 0.000000e+00 : f32
    %13 = vector.broadcast %cst_11 : f32 to vector<128x8xf32>
    %14 = arith.maximumf %12, %13 : vector<128x8xf32>
    %c0_12 = arith.constant 0 : index
    %c0_13 = arith.constant 0 : index
    %15 = vector.load %arg6[%c0_12, %c0_13] : memref<8x8xf32, #tpu.memory_space<vmem>>, vector<8x8xf32>
    %cst_14 = arith.constant dense<0.000000e+00> : vector<128x8xf32>
    %16 = tpu.matmul %14, %15, %cst_14 {dimension_numbers = #tpu.dot_dimension_numbers<[1], [0], [0], [1], [0, 0, 1, 1], [], []>} : vector<128x8xf32>, vector<8x8xf32>, vector<128x8xf32> -> vector<128x8xf32>
    %c0_15 = arith.constant 0 : index
    %c0_16 = arith.constant 0 : index
    %17 = vector.load %arg7[%c0_15, %c0_16] : memref<1x8xf32, #tpu.memory_space<vmem>>, vector<1x8xf32>
    %18 = vector.broadcast %17 : vector<1x8xf32> to vector<128x8xf32>
    %19 = arith.addf %16, %18 : vector<128x8xf32>
    %c0_17 = arith.constant 0 : index
    %c0_18 = arith.constant 0 : index
    %20 = vector.load %arg8[%c0_17, %c0_18] : memref<128x8xf32, #tpu.memory_space<vmem>>, vector<128x8xf32>
    tpu.vector_store %arg8[%c0_17, %c0_18], %19 {strides = array<i32>} : memref<128x8xf32, #tpu.memory_space<vmem>>, vector<128x8xf32>,
    return
  }
  func.func @transform_0(%arg0: i32) -> (i32, i32) {
    %c0_i32 = arith.constant 0 : i32
    %c0_i32_0 = arith.constant 0 : i32
    return %arg0, %c0_i32 : i32, i32
  }
  func.func @transform_1(%arg0: i32) -> (i32, i32) {
    %c0_i32 = arith.constant 0 : i32
    %c0_i32_0 = arith.constant 0 : i32
    %c0_i32_1 = arith.constant 0 : i32
    return %c0_i32, %c0_i32_0 : i32, i32
  }
  func.func @transform_2(%arg0: i32) -> (i32, i32) {
    %c0_i32 = arith.constant 0 : i32
    %c0_i32_0 = arith.constant 0 : i32
    %c0_i32_1 = arith.constant 0 : i32
    return %c0_i32, %c0_i32_0 : i32, i32
  }
  func.func @transform_3(%arg0: i32) -> (i32, i32) {
    %c0_i32 = arith.constant 0 : i32
    %c0_i32_0 = arith.constant 0 : i32
    %c0_i32_1 = arith.constant 0 : i32
    return %c0_i32, %c0_i32_0 : i32, i32
  }
  func.func @transform_4(%arg0: i32) -> (i32, i32) {
    %c0_i32 = arith.constant 0 : i32
    %c0_i32_0 = arith.constant 0 : i32
    %c0_i32_1 = arith.constant 0 : i32
    return %c0_i32, %c0_i32_0 : i32, i32
  }
  func.func @transform_5(%arg0: i32) -> (i32, i32) {
    %c0_i32 = arith.constant 0 : i32
    %c0_i32_0 = arith.constant 0 : i32
    %c0_i32_1 = arith.constant 0 : i32
    return %c0_i32, %c0_i32_0 : i32, i32
  }
  func.func @transform_6(%arg0: i32) -> (i32, i32) {
    %c0_i32 = arith.constant 0 : i32
    %c0_i32_0 = arith.constant 0 : i32
    %c0_i32_1 = arith.constant 0 : i32
    return %c0_i32, %c0_i32_0 : i32, i32
  }
  func.func @transform_7(%arg0: i32) -> (i32, i32) {
    %c0_i32 = arith.constant 0 : i32
    %c0_i32_0 = arith.constant 0 : i32
    return %arg0, %c0_i32 : i32, i32
  }
}

</mosaic_0001>

<bundles_post_ra>
// kernel: tpu_custom_call.1
= control target key start
LH: loop header
LB: loop body
LE: loop exit
PB: predicated region body
PF: predicated region fallthrough
CT: control target
= control target key end

     0   :  { %s1285_s24 = smov 0   ;;  %s1439_s0 = inlined_call_operand.vmem [shape: f32[256,16], index: 0, kind: input, shape index: {}]   ;;  %s1440_s1 = inlined_call_operand.vmem [shape: f32[16,32], index: 1, kind: input, shape index: {}]   ;;  %s1441_s2 = inlined_call_operand.vmem [shape: f32[1,32], index: 2, kind: input, shape index: {}]   ;;  %s1442_s3 = inlined_call_operand.vmem [shape: f32[32,8], index: 3, kind: input, shape index: {}]   ;;  %s1443_s4 = inlined_call_operand.vmem [shape: f32[1,8], index: 4, kind: input, shape index: {}]   ;;  %s1444_s5 = inlined_call_operand.vmem [shape: f32[8,8], index: 5, kind: input, shape index: {}]   ;;  %s1445_s6 = inlined_call_operand.vmem [shape: f32[1,8], index: 6, kind: input, shape index: {}]   ;;  %s1446_s7 = inlined_call_operand.vmem [shape: f32[256,8], index: 7, kind: output, shape index: {}]  }
   0x1 LB: > { %s1012_s25 = sadd.s32 4294967295, %s1243_s24   ;;  %p1016_p0 = scmp.ge.s32.totalorder %s1243_s24, 1  ;;  %s1243_s24 = sphi %s1285_s24, %s17_s24  }
   0x2   : > { %p238_p1 = scmp.lt.s32.totalorder %s1243_s24, 3 }
   0x4   : > { %p239_p2 = pnand %p1016_p0, %p238_p1 }
   0x5   : > { %v298_v0 = vld [vmem:[%s1440_s1] sm:$0xff] (!%p239_p2)  ;;  %v299_v1 = vld [vmem:[%s1440_s1 + $0x8] sm:$0xff] (!%p239_p2)  ;;  %s1017_s30 = sshll.u32 (!%p239_p2), %s1012_s25, 4  ;;  %vm307_vm0 = vcmask (!%p239_p2), 130048   ;;  %v519_v6 = vld [vmem:[%s1442_s3 + $0x10] sm:$0xff] (!%p239_p2)  ;;  %vm528_vm1 = vcmask (!%p239_p2), 261120  }
   0x6   : > { %242 = sbr.rel (%p239_p2) target bundleno = 698 (0x2ba), region = 48  ;;  %v517_v2 = vld [vmem:[%s1442_s3] sm:$0xff] (!%p239_p2)  ;;  %v1215_v3 = vpack.c.bf16 (!%p239_p2), %v299_v1, %v298_v0  ;;  %p271_p3 = scmp.lt.s32.totalorder (!%p239_p2), %s1017_s30, 31  ;;  %v518_v4 = vld [vmem:[%s1442_s3 + $0x8] sm:$0xff] (!%p239_p2)  ;;  %v520_v7 = vld [vmem:[%s1442_s3 + $0x18] sm:$0xff] (!%p239_p2)  ;;  %vm746_vm2 = vcmask (!%p239_p2), 64512  }
   0x7   : > { %v1219_v5 = vpack.c.bf16 (!%p239_p2), %v518_v4, %v517_v2  ;;  %v1223_v12 = vpack.c.bf16 (!%p239_p2), %v520_v7, %v519_v6  ;;  %v738_v25 = vld [vmem:[%s1444_s5] sm:$0xff] (!%p239_p2) }
   0x8   : > { %1216 = vmatprep.subr.bf16.mxu0 (!%p239_p2), %v1215_v3  ;;  %1227 = vmatprep.subr.bf16.mxu1 (!%p239_p2), %v1215_v3  ;;  %v1021_v26 = vld [vmem:[%s1441_s2] ss:$0 sm:$0xff] (!%p239_p2) }
   0x9   : > { %1218 = vmatpush3.bf16.msra.mxu0 (!%p239_p2), %v1215_v3  ;;  %1228 = vmatpush3.bf16.msra.mxu1 (!%p239_p2), %v1215_v3 }
   0xa   : > { %1220 = vmatprep.subr.bf16.mxu1 (!%p239_p2), %v1219_v5  ;;  %1189 = vmatprep.subr.mxu0 (!%p239_p2), %v738_v25 }
   0xd   : > { %s1448_s30 = smov (!%p271_p3, %s1017_s30), 31 }
   0xe   : > { %s1018_s12 = sshll.u32 %s1448_s30, 3 }
   0xf   : > { %s1313_s15 = scalar_lea.vmem %s1439_s0, %s1018_s12  ;;  %s1402_s9 = scalar_lea.vmem %s1446_s7, %s1018_s12 }
  0x10   : > { %v282_v8 = vld [vmem:[%s1313_s15] sm:$0xff]  ;;  %v283_v9 = vld [vmem:[%s1313_s15 + $0x8] sm:$0xff]  ;;  %v284_v10 = vld [vmem:[%s1313_s15 + $0x10] sm:$0xff] }
  0x11   : > { %1133 = vmatprep.mubr.msk.f32.mxu0 %vm307_vm0, %v282_v8  ;;  %v290_v11 = vld [vmem:[%s1313_s15 + $0x40] sm:$0xff]  ;;  %v285_v13 = vld [vmem:[%s1313_s15 + $0x18] sm:$0xff]  ;;  %v291_v14 = vld [vmem:[%s1313_s15 + $0x48] sm:$0xff] }
  0x12   : > { %1134 = vmatmul.mubr.msk.f32.vlgmr.msra.gmra.mrb[0].mxu0 %vm307_vm0, %v283_v9  ;;  %1145 = vmatprep.mubr.msk.f32.mxu1 %vm307_vm0, %v290_v11  ;;  %v292_v15 = vld [vmem:[%s1313_s15 + $0x50] sm:$0xff]  ;;  %v286_v16 = vld [vmem:[%s1313_s15 + $0x20] sm:$0xff]  ;;  %v293_v17 = vld [vmem:[%s1313_s15 + $0x58] sm:$0xff] }
  0x13   : > { %1136 = vmatprep.mubr.msk.f32.mxu0 %vm307_vm0, %v284_v10  ;;  %1146 = vmatmul.mubr.msk.f32.vlgmr.msra.gmra.mrb[0].mxu1 %vm307_vm0, %v291_v14  ;;  %v294_v18 = vld [vmem:[%s1313_s15 + $0x60] sm:$0xff]  ;;  %v287_v19 = vld [vmem:[%s1313_s15 + $0x28] sm:$0xff]  ;;  %v288_v20 = vld [vmem:[%s1313_s15 + $0x30] sm:$0xff] }
  0x14   : > { %1148 = vmatprep.mubr.msk.f32.mxu1 %vm307_vm0, %v292_v15  ;;  %1222 = vmatpush3.bf16.msra.mxu1 %v1219_v5  ;;  %v295_v21 = vld [vmem:[%s1313_s15 + $0x68] sm:$0xff]  ;;  %v296_v22 = vld [vmem:[%s1313_s15 + $0x70] sm:$0xff]  ;;  %v289_v23 = vld [vmem:[%s1313_s15 + $0x38] sm:$0xff] }
  0x15   : > { %1224 = vmatprep.subr.bf16.mxu1 %v1223_v12  ;;  %v297_v24 = vld [vmem:[%s1313_s15 + $0x78] sm:$0xff]  ;;  %1190 = vmatpush3.msra.mxu0 %v738_v25  ;;  %v1038_v11 = vld [vmem:[%s1443_s4] ss:$0 sm:$0xff] }
  0x16   : > { %1137 = vmatmul.mubr.msk.f32.gmra.mrb[2].mxu0 %vm307_vm0, %v285_v13 }
  0x17   : > { %1139 = vmatprep.mubr.msk.f32.mxu0 %vm307_vm0, %v286_v16  ;;  %1149 = vmatmul.mubr.msk.f32.gmra.mrb[2].mxu1 %vm307_vm0, %v293_v17 }
  0x18   : > { %1151 = vmatprep.mubr.msk.f32.mxu1 %vm307_vm0, %v294_v18  ;;  %1226 = vmatpush3.bf16.msra.mxu1 %v1223_v12 }
  0x1a   : > { %1140 = vmatmul.mubr.msk.f32.gmra.mrb[4].mxu0 %vm307_vm0, %v287_v19 }
  0x1b   : > { %1142 = vmatprep.mubr.msk.f32.mxu0 %vm307_vm0, %v288_v20  ;;  %1152 = vmatmul.mubr.msk.f32.gmra.mrb[4].mxu1 %vm307_vm0, %v295_v21 }
  0x1c   : > { %1154 = vmatprep.mubr.msk.f32.mxu1 %vm307_vm0, %v296_v22 }
  0x1e   : > { %1143 = vmatmul.mubr.msk.f32.gmra.mrb[6].mxu0 %vm307_vm0, %v289_v23 }
  0x1f   : > { %1155 = vmatmul.mubr.msk.f32.gmra.mrb[6].mxu1 %vm307_vm0, %v297_v24 }
  0xe5   : > { %v1135_v27 = vpop.f32.mrb[0].mxu0 }
  0xe6   : > { %v428_v28 = vadd.f32 %v1135_v27, %v1021_v26  ;;  %v422_v29 = vpop.f32.mrb[1].mxu0  ;;  %v1147_v31 = vpop.f32.mrb[0].mxu1 }
  0xe7   : > { %v423_v30 = vadd.f32 %v1021_v26, %v422_v29  ;;  %v462_v32 = vpop.f32.mrb[1].mxu1  ;;  %v468_v62 = vadd.f32 %v1147_v31, %v1021_v26 }
  0xe8   : > { %v502_v35 = vmax.f32 %v428_v28, 0.0  ;;  %v463_v51 = vadd.f32 %v1021_v26, %v462_v32 }
  0xe9   : > { %v501_v33 = vmax.f32 %v423_v30, 0.0  ;;  %v1138_v34 = vpop.f32.mrb[2].mxu0  ;;  %v510_v1 = vmax.f32 %v468_v62, 0.0 }
  0xea   : > { %v438_v36 = vadd.f32 %v1138_v34, %v1021_v26  ;;  %v432_v37 = vpop.f32.mrb[3].mxu0  ;;  %v1150_v39 = vpop.f32.mrb[2].mxu1  ;;  %v509_v59 = vmax.f32 %v463_v51, 0.0 }
  0xeb   : > { %v433_v38 = vadd.f32 %v1021_v26, %v432_v37  ;;  %1165 = vmatprep.mubr.msk.f32.mxu1 %vm528_vm1, %v501_v33  ;;  %v472_v40 = vpop.f32.mrb[3].mxu1  ;;  %v478_v2 = vadd.f32 %v1150_v39, %v1021_v26 }
  0xec   : > { %1166 = vmatmul.mubr.msk.f32.vlgmr.msra.gmra.mrb[8].mxu1 %vm528_vm1, %v502_v35  ;;  %v504_v43 = vmax.f32 %v438_v36, 0.0  ;;  %v473_v60 = vadd.f32 %v1021_v26, %v472_v40 }
  0xed   : > { %v503_v41 = vmax.f32 %v433_v38, 0.0  ;;  %v1141_v42 = vpop.f32.mrb[4].mxu0  ;;  %v512_v5 = vmax.f32 %v478_v2, 0.0 }
  0xee   : > { %v448_v44 = vadd.f32 %v1141_v42, %v1021_v26  ;;  %v442_v45 = vpop.f32.mrb[5].mxu0  ;;  %v1153_v47 = vpop.f32.mrb[4].mxu1  ;;  %v511_v63 = vmax.f32 %v473_v60, 0.0  ;;  %v1055_v60 = vld [vmem:[%s1445_s6] ss:$0 sm:$0xff] }
  0xef   : > { %v443_v46 = vadd.f32 %v1021_v26, %v442_v45  ;;  %1168 = vmatprep.mubr.msk.f32.mxu1 %vm528_vm1, %v503_v41  ;;  %v482_v48 = vpop.f32.mrb[5].mxu1  ;;  %v488_v6 = vadd.f32 %v1153_v47, %v1021_v26 }
  0xf0   : > { %1169 = vmatmul.mubr.msk.f32.gmra.mrb[10].mxu1 %vm528_vm1, %v504_v43  ;;  %v506_v52 = vmax.f32 %v448_v44, 0.0  ;;  %v483_v0 = vadd.f32 %v1021_v26, %v482_v48 }
  0xf1   : > { %v505_v49 = vmax.f32 %v443_v46, 0.0  ;;  %v1144_v50 = vpop.f32.mrb[6].mxu0  ;;  %v514_v8 = vmax.f32 %v488_v6, 0.0 }
  0xf2   : > { %v458_v53 = vadd.f32 %v1144_v50, %v1021_v26  ;;  %v452_v54 = vpop.f32.mrb[7].mxu0  ;;  %v1156_v56 = vpop.f32.mrb[6].mxu1  ;;  %v513_v3 = vmax.f32 %v483_v0, 0.0 }
  0xf3   : > { %v453_v55 = vadd.f32 %v1021_v26, %v452_v54  ;;  %1171 = vmatprep.mubr.msk.f32.mxu1 %vm528_vm1, %v505_v49  ;;  %v492_v57 = vpop.f32.mrb[7].mxu1  ;;  %v498_v9 = vadd.f32 %v1156_v56, %v1021_v26 }
  0xf4   : > { %1172 = vmatmul.mubr.msk.f32.gmra.mrb[12].mxu1 %vm528_vm1, %v506_v52  ;;  %v508_v61 = vmax.f32 %v458_v53, 0.0  ;;  %v493_v4 = vadd.f32 %v1021_v26, %v492_v57 }
  0xf5   : > { %v507_v58 = vmax.f32 %v453_v55, 0.0  ;;  %v516_v10 = vmax.f32 %v498_v9, 0.0 }
  0xf6   : > { %v515_v7 = vmax.f32 %v493_v4, 0.0 }
  0xf7   : > { %1174 = vmatprep.mubr.msk.f32.mxu1 %vm528_vm1, %v507_v58 }
  0xf8   : > { %1175 = vmatmul.mubr.msk.f32.gmra.mrb[14].mxu1 %vm528_vm1, %v508_v61 }
  0xf9   : > { %1177 = vmatprep.mubr.msk.f32.mxu1 %vm528_vm1, %v509_v59 }
  0xfc   : > { %1178 = vmatmul.mubr.msk.f32.gmra.mrb[16].mxu1 %vm528_vm1, %v510_v1 }
  0xfd   : > { %1180 = vmatprep.mubr.msk.f32.mxu1 %vm528_vm1, %v511_v63 }
 0x100   : > { %1181 = vmatmul.mubr.msk.f32.gmra.mrb[18].mxu1 %vm528_vm1, %v512_v5 }
 0x101   : > { %1183 = vmatprep.mubr.msk.f32.mxu1 %vm528_vm1, %v513_v3 }
 0x104   : > { %1184 = vmatmul.mubr.msk.f32.gmra.mrb[20].mxu1 %vm528_vm1, %v514_v8 }
 0x105   : > { %1186 = vmatprep.mubr.msk.f32.mxu1 %vm528_vm1, %v515_v7 }
 0x108   : > { %1187 = vmatmul.mubr.msk.f32.gmra.mrb[22].mxu1 %vm528_vm1, %v516_v10 }
 0x1bf   : > { %v1167_v12 = vpop.f32.mrb[8].mxu1 }
 0x1c0   : > { %v649_v13 = vadd.f32 %v1167_v12, %v1038_v11  ;;  %v643_v14 = vpop.f32.mrb[9].mxu1 }
 0x1c1   : > { %v644_v15 = vadd.f32 %v1038_v11, %v643_v14 }
 0x1c2   : > { %v723_v18 = vmax.f32 %v649_v13, 0.0 }
 0x1c3   : > { %v722_v16 = vmax.f32 %v644_v15, 0.0  ;;  %v1170_v17 = vpop.f32.mrb[10].mxu1 }
 0x1c4   : > { %v659_v19 = vadd.f32 %v1170_v17, %v1038_v11  ;;  %v653_v20 = vpop.f32.mrb[11].mxu1 }
 0x1c5   : > { %v654_v21 = vadd.f32 %v1038_v11, %v653_v20  ;;  %1191 = vmatprep.mubr.msk.f32.mxu0 %vm746_vm2, %v722_v16 }
 0x1c6   : > { %1192 = vmatmul.mubr.msk.f32.vlgmr.msra.gmra.mrb[8].mxu0 %vm746_vm2, %v723_v18  ;;  %v725_v24 = vmax.f32 %v659_v19, 0.0 }
 0x1c7   : > { %v724_v22 = vmax.f32 %v654_v21, 0.0  ;;  %v1173_v23 = vpop.f32.mrb[12].mxu1 }
 0x1c8   : > { %v669_v25 = vadd.f32 %v1173_v23, %v1038_v11  ;;  %v663_v26 = vpop.f32.mrb[13].mxu1 }
 0x1c9   : > { %v664_v27 = vadd.f32 %v1038_v11, %v663_v26  ;;  %1194 = vmatprep.mubr.msk.f32.mxu0 %vm746_vm2, %v724_v22 }
 0x1ca   : > { %1195 = vmatmul.mubr.msk.f32.gmra.mrb[10].mxu0 %vm746_vm2, %v725_v24  ;;  %v727_v30 = vmax.f32 %v669_v25, 0.0 }
 0x1cb   : > { %v726_v28 = vmax.f32 %v664_v27, 0.0  ;;  %v1176_v29 = vpop.f32.mrb[14].mxu1 }
 0x1cc   : > { %v679_v31 = vadd.f32 %v1176_v29, %v1038_v11  ;;  %v673_v32 = vpop.f32.mrb[15].mxu1 }
 0x1cd   : > { %v674_v33 = vadd.f32 %v1038_v11, %v673_v32  ;;  %1197 = vmatprep.mubr.msk.f32.mxu0 %vm746_vm2, %v726_v28 }
 0x1ce   : > { %1198 = vmatmul.mubr.msk.f32.gmra.mrb[12].mxu0 %vm746_vm2, %v727_v30  ;;  %v729_v36 = vmax.f32 %v679_v31, 0.0 }
 0x1cf   : > { %v728_v34 = vmax.f32 %v674_v33, 0.0  ;;  %v1179_v35 = vpop.f32.mrb[16].mxu1 }
 0x1d0   : > { %v689_v37 = vadd.f32 %v1179_v35, %v1038_v11  ;;  %v683_v38 = vpop.f32.mrb[17].mxu1 }
 0x1d1   : > { %v684_v39 = vadd.f32 %v1038_v11, %v683_v38  ;;  %1200 = vmatprep.mubr.msk.f32.mxu0 %vm746_vm2, %v728_v34 }
 0x1d2   : > { %1201 = vmatmul.mubr.msk.f32.gmra.mrb[14].mxu0 %vm746_vm2, %v729_v36  ;;  %v731_v42 = vmax.f32 %v689_v37, 0.0 }
 0x1d3   : > { %v730_v40 = vmax.f32 %v684_v39, 0.0  ;;  %v1182_v41 = vpop.f32.mrb[18].mxu1 }
 0x1d4   : > { %v699_v43 = vadd.f32 %v1182_v41, %v1038_v11  ;;  %v693_v44 = vpop.f32.mrb[19].mxu1 }
 0x1d5   : > { %v694_v45 = vadd.f32 %v1038_v11, %v693_v44  ;;  %1203 = vmatprep.mubr.msk.f32.mxu0 %vm746_vm2, %v730_v40 }
 0x1d6   : > { %1204 = vmatmul.mubr.msk.f32.gmra.mrb[16].mxu0 %vm746_vm2, %v731_v42  ;;  %v733_v48 = vmax.f32 %v699_v43, 0.0 }
 0x1d7   : > { %v732_v46 = vmax.f32 %v694_v45, 0.0  ;;  %v1185_v47 = vpop.f32.mrb[20].mxu1 }
 0x1d8   : > { %v709_v49 = vadd.f32 %v1185_v47, %v1038_v11  ;;  %v703_v50 = vpop.f32.mrb[21].mxu1 }
 0x1d9   : > { %v704_v51 = vadd.f32 %v1038_v11, %v703_v50  ;;  %1206 = vmatprep.mubr.msk.f32.mxu0 %vm746_vm2, %v732_v46 }
 0x1da   : > { %1207 = vmatmul.mubr.msk.f32.gmra.mrb[18].mxu0 %vm746_vm2, %v733_v48  ;;  %v735_v54 = vmax.f32 %v709_v49, 0.0 }
 0x1db   : > { %v734_v52 = vmax.f32 %v704_v51, 0.0  ;;  %v1188_v53 = vpop.f32.mrb[22].mxu1 }
 0x1dc   : > { %v719_v55 = vadd.f32 %v1188_v53, %v1038_v11  ;;  %v713_v56 = vpop.f32.mrb[23].mxu1 }
 0x1dd   : > { %v714_v57 = vadd.f32 %v1038_v11, %v713_v56  ;;  %1209 = vmatprep.mubr.msk.f32.mxu0 %vm746_vm2, %v734_v52 }
 0x1de   : > { %1210 = vmatmul.mubr.msk.f32.gmra.mrb[20].mxu0 %vm746_vm2, %v735_v54  ;;  %v737_v59 = vmax.f32 %v719_v55, 0.0 }
 0x1df   : > { %v736_v58 = vmax.f32 %v714_v57, 0.0 }
 0x1e1   : > { %1212 = vmatprep.mubr.msk.f32.mxu0 %vm746_vm2, %v736_v58 }
 0x1e2   : > { %1213 = vmatmul.mubr.msk.f32.gmra.mrb[22].mxu0 %vm746_vm2, %v737_v59 }
 0x299   : > { %v1193_v61 = vpop.f32.mrb[8].mxu0 }
 0x29a   : > { %v867_v62 = vadd.f32 %v1193_v61, %v1055_v60  ;;  %v861_v63 = vpop.f32.mrb[9].mxu0 }
 0x29b   : > { %v862_v0 = vadd.f32 %v1055_v60, %v861_v63 }
 0x29c   : > { %941 = vst.msk [vmem:[%s1402_s9 + $0x8] sm:$0xff] %vm746_vm2, %v867_v62 }
 0x29d   : > { %940 = vst.msk [vmem:[%s1402_s9] sm:$0xff] %vm746_vm2, %v862_v0  ;;  %v1196_v1 = vpop.f32.mrb[10].mxu0 }
 0x29e   : > { %v877_v2 = vadd.f32 %v1196_v1, %v1055_v60  ;;  %v871_v3 = vpop.f32.mrb[11].mxu0 }
 0x29f   : > { %v872_v4 = vadd.f32 %v1055_v60, %v871_v3 }
 0x2a0   : > { %943 = vst.msk [vmem:[%s1402_s9 + $0x18] sm:$0xff] %vm746_vm2, %v877_v2 }
 0x2a1   : > { %942 = vst.msk [vmem:[%s1402_s9 + $0x10] sm:$0xff] %vm746_vm2, %v872_v4  ;;  %v1199_v5 = vpop.f32.mrb[12].mxu0 }
 0x2a2   : > { %v887_v6 = vadd.f32 %v1199_v5, %v1055_v60  ;;  %v881_v7 = vpop.f32.mrb[13].mxu0 }
 0x2a3   : > { %v882_v8 = vadd.f32 %v1055_v60, %v881_v7 }
 0x2a4   : > { %945 = vst.msk [vmem:[%s1402_s9 + $0x28] sm:$0xff] %vm746_vm2, %v887_v6 }
 0x2a5   : > { %944 = vst.msk [vmem:[%s1402_s9 + $0x20] sm:$0xff] %vm746_vm2, %v882_v8  ;;  %v1202_v9 = vpop.f32.mrb[14].mxu0 }
 0x2a6   : > { %v897_v10 = vadd.f32 %v1202_v9, %v1055_v60  ;;  %v891_v11 = vpop.f32.mrb[15].mxu0 }
 0x2a7   : > { %v892_v12 = vadd.f32 %v1055_v60, %v891_v11 }
 0x2a8   : > { %947 = vst.msk [vmem:[%s1402_s9 + $0x38] sm:$0xff] %vm746_vm2, %v897_v10 }
 0x2a9   : > { %946 = vst.msk [vmem:[%s1402_s9 + $0x30] sm:$0xff] %vm746_vm2, %v892_v12  ;;  %v1205_v13 = vpop.f32.mrb[16].mxu0 }
 0x2aa   : > { %v907_v14 = vadd.f32 %v1205_v13, %v1055_v60  ;;  %v901_v15 = vpop.f32.mrb[17].mxu0 }
 0x2ab   : > { %v902_v16 = vadd.f32 %v1055_v60, %v901_v15 }
 0x2ac   : > { %949 = vst.msk [vmem:[%s1402_s9 + $0x48] sm:$0xff] %vm746_vm2, %v907_v14 }
 0x2ad   : > { %948 = vst.msk [vmem:[%s1402_s9 + $0x40] sm:$0xff] %vm746_vm2, %v902_v16  ;;  %v1208_v17 = vpop.f32.mrb[18].mxu0 }
 0x2ae   : > { %v917_v18 = vadd.f32 %v1208_v17, %v1055_v60  ;;  %v911_v19 = vpop.f32.mrb[19].mxu0 }
 0x2af   : > { %v912_v20 = vadd.f32 %v1055_v60, %v911_v19 }
 0x2b0   : > { %951 = vst.msk [vmem:[%s1402_s9 + $0x58] sm:$0xff] %vm746_vm2, %v917_v18 }
 0x2b1   : > { %950 = vst.msk [vmem:[%s1402_s9 + $0x50] sm:$0xff] %vm746_vm2, %v912_v20  ;;  %v1211_v21 = vpop.f32.mrb[20].mxu0 }
 0x2b2   : > { %v927_v22 = vadd.f32 %v1211_v21, %v1055_v60  ;;  %v921_v23 = vpop.f32.mrb[21].mxu0 }
 0x2b3   : > { %v922_v24 = vadd.f32 %v1055_v60, %v921_v23 }
 0x2b4   : > { %953 = vst.msk [vmem:[%s1402_s9 + $0x68] sm:$0xff] %vm746_vm2, %v927_v22 }
 0x2b5   : > { %952 = vst.msk [vmem:[%s1402_s9 + $0x60] sm:$0xff] %vm746_vm2, %v922_v24  ;;  %v1214_v25 = vpop.f32.mrb[22].mxu0 }
 0x2b6   : > { %v937_v26 = vadd.f32 %v1214_v25, %v1055_v60  ;;  %v931_v27 = vpop.f32.mrb[23].mxu0 }
 0x2b7   : > { %v932_v28 = vadd.f32 %v1055_v60, %v931_v27 }
 0x2b8   : > { %955 = vst.msk [vmem:[%s1402_s9 + $0x78] sm:$0xff] %vm746_vm2, %v937_v26 }
 0x2b9   : > { %954 = vst.msk [vmem:[%s1402_s9 + $0x70] sm:$0xff] %vm746_vm2, %v932_v28 }
 0x2ba PF: > { %s17_s24 = sadd.s32 1, %s1243_s24  }
 0x2bb   : > { %p14_p4 = scmp.ge.s32.totalorder %s17_s24, 4  }
 0x2bd   :  { %16 = sbr.rel (!%p14_p4) target bundleno = 1 (0x1), region = 78 }

</bundles_post_ra>
